<compile_context>
chip_gen: v5e
topology: v5e:2x2
jax: 0.10.0
libtpu: 0.0.40
codegen_flags: <defaults>
</compile_context>

<pallas_src>
import functools
import itertools

import numpy as np
import jax
import jax.numpy as jnp
from jax.experimental import pallas as pl
from jax.experimental.pallas import tpu as pltpu

ALPHA = 0.8
BETA = 0.2
EPS = 1e-4
PAD_LOGIT = -30.0          # sigmoid(-30) ~ 9e-14; avoids inf intermediates
HW_TILE_TARGET = 2048      # lanes per reduction tile


def _round_up(x, m):
    return ((x + m - 1) // m) * m


def _pick_hw_tile(hwp, target=HW_TILE_TARGET):
    t = min(hwp, target)
    while hwp % t != 0:      # hwp is a multiple of 128, so this ends at >=128
        t -= 128
    return t


# ----------------------------- Pallas kernel --------------------------------
def _cost_kernel(pred_ref, tgt_ref, probt_ref, ct_ref,
                 num_acc, s2_acc, t2_acc, *, alpha, beta):
    # pred_ref : [1, Np, TILE] mask logits      (padded rows filled with PAD_LOGIT)
    # tgt_ref  : [1, Tp, TILE] resized GT masks (padded rows = 0)
    # probt_ref: [1, Tp, Np]   matching prob, transposed (padded = 0)
    # ct_ref   : [1, Tp, Np]   output C^T (lane-dense in N)
    k = pl.program_id(1)

    @pl.when(k == 0)
    def _init():
        num_acc[...] = jnp.zeros_like(num_acc)
        s2_acc[...] = jnp.zeros_like(s2_acc)
        t2_acc[...] = jnp.zeros_like(t2_acc)

    x = pred_ref[0].astype(jnp.float32)                        # [Np, TILE]
    s = pl.reciprocal(1.0 + jnp.exp(-x), approx=True)          # sigmoid (EUP)
    t = tgt_ref[0].astype(jnp.float32)                         # [Tp, TILE]

    # Single-pass bf16 MXU matmuls, f32 accumulation.
    s_b = s.astype(jnp.bfloat16)
    t_b = t.astype(jnp.bfloat16)
    dn = (((1,), (1,)), ((), ()))                              # contract HW of both
    # partial numerator^T: [Tp, Np]
    num_acc[...] += jax.lax.dot_general(
        t_b, s_b, dn, preferred_element_type=jnp.float32)
    # partial sum(sigmoid^2) as a lane-major [1, Np] row: ones-row matmul avoids
    # a cross-lane transpose and costs only ~1/Tp of the main matmul.
    ss_b = (s * s).astype(jnp.bfloat16)
    ones_row = jnp.ones((1, ss_b.shape[-1]), jnp.bfloat16)
    s2_acc[...] += jax.lax.dot_general(
        ones_row, ss_b, dn, preferred_element_type=jnp.float32)
    # partial sum(t^2): [Tp, 1] lane reduction (XLU slot)
    t2_acc[...] += jnp.sum(t * t, axis=-1, keepdims=True)

    @pl.when(k == pl.num_programs(1) - 1)
    def _finalize():
        denom = s2_acc[...] + t2_acc[...] + EPS                # [Tp, Np]
        score = (2.0 * num_acc[...]) * pl.reciprocal(denom, approx=True)
        probt = probt_ref[0].astype(jnp.float32)               # [Tp, Np]
        # score**alpha * prob**beta fused into one exp; alpha, beta > 0 so
        # log(0) = -inf -> exp(-inf) = 0, matching torch.pow(0, p).
        ct_ref[0] = jnp.exp(alpha * jnp.log(score) + beta * jnp.log(probt))


def compute_cost_matrices(pred_flat, tgt_flat, probT, alpha=ALPHA, beta=BETA):
    """Batched cost matrices (transposed).

    pred_flat [B, N, HW] logits, tgt_flat [B, Tmax, HW], probT [B, Tmax, N]
    -> C^T [B, Tmax, N] with C[n, t] = dice(n, t)**alpha * prob[n, t]**beta.
    """
    B, N, HW = pred_flat.shape
    Tmax = tgt_flat.shape[1]
    Np = _round_up(N, 128)          # lane-dense output (and MXU columns) in N
    Tp = _round_up(Tmax, 8)
    HWp = _round_up(HW, 128)
    tile = _pick_hw_tile(HWp)

    # Only the cheap N / T row dims are padded in the common case; the HW lane
    # pad is skipped whenever H*W is already a multiple of 128.
    pred_p = pred_flat.astype(jnp.float32)
    if Np != N:
        pred_p = jnp.pad(pred_p, ((0, 0), (0, Np - N), (0, 0)),
                         constant_values=PAD_LOGIT)
    if HWp != HW:
        pred_p = jnp.pad(pred_p, ((0, 0), (0, 0), (0, HWp - HW)),
                         constant_values=PAD_LOGIT)
    tgt_p = tgt_flat.astype(jnp.float32)
    if Tp != Tmax or HWp != HW:
        tgt_p = jnp.pad(tgt_p, ((0, 0), (0, Tp - Tmax), (0, HWp - HW)))
    probt_p = probT.astype(jnp.float32)
    if Tp != Tmax or Np != N:
        probt_p = jnp.pad(probt_p, ((0, 0), (0, Tp - Tmax), (0, Np - N)))

    kernel = functools.partial(_cost_kernel, alpha=alpha, beta=beta)
    ct = pl.pallas_call(
        kernel,
        out_shape=jax.ShapeDtypeStruct((B, Tp, Np), jnp.float32),
        grid_spec=pltpu.PrefetchScalarGridSpec(
            num_scalar_prefetch=0,
            grid=(B, HWp // tile),
            in_specs=[
                pl.BlockSpec((1, Np, tile), lambda b, k: (b, 0, k)),
                pl.BlockSpec((1, Tp, tile), lambda b, k: (b, 0, k)),
                pl.BlockSpec((1, Tp, Np), lambda b, k: (b, 0, 0)),
            ],
            out_specs=pl.BlockSpec((1, Tp, Np), lambda b, k: (b, 0, 0)),
            scratch_shapes=[
                pltpu.VMEM((Tp, Np), jnp.float32),   # numerator^T accumulator
                pltpu.VMEM((1, Np), jnp.float32),    # sum(sigmoid^2) per pred
                pltpu.VMEM((Tp, 1), jnp.float32),    # sum(t^2) per target
            ]),
        compiler_params=pltpu.CompilerParams(
            dimension_semantics=("parallel", "arbitrary")),
    )(pred_p, tgt_p, probt_p)
    return ct[:, :Tmax, :N]


# ------------------------------- glue ---------------------------------------
def _bilinear_matrix(in_size, out_size):
    """Row-interp matrix matching F.interpolate(mode='bilinear', align_corners=False)."""
    m = np.zeros((out_size, in_size), dtype=np.float32)
    scale = in_size / out_size
    for o in range(out_size):
        src = max((o + 0.5) * scale - 0.5, 0.0)
        i0 = min(int(np.floor(src)), in_size - 1)
        i1 = min(i0 + 1, in_size - 1)
        w1 = src - i0
        m[o, i0] += 1.0 - w1
        m[o, i1] += w1
    return m


def _prepare_targets(target, input_shape, H, W, dtype):
    """Zero-pad target masks to input_shape and bilinearly resize to (H, W)."""
    tgt_masks = jnp.asarray(target['masks'], dtype=dtype)            # [T, oh, ow]
    T, ori_h, ori_w = tgt_masks.shape
    padded = jnp.zeros((T, input_shape[0], input_shape[1]), dtype)
    padded = padded.at[:, :ori_h, :ori_w].set(tgt_masks)
    Rh = jnp.asarray(_bilinear_matrix(input_shape[0], H))
    Rw = jnp.asarray(_bilinear_matrix(input_shape[1], W))
    tgt_resized = jnp.einsum('ah,thw,bw->tab', Rh, padded, Rw)        # [T, H, W]
    return tgt_resized.reshape(T, H * W)


def _build_batched_inputs(outputs, targets, input_shape):
    """Stack all images into one set of kernel inputs (pad T to the batch max)."""
    pred_masks = outputs['pred_masks']                               # [B, N, H, W]
    pred_scores = jax.nn.sigmoid(outputs['pred_logits'])             # [B, N, C]
    B, N, H, W = pred_masks.shape
    HW = H * W
    t_counts = [int(np.asarray(jax.device_get(targets[i]['labels'])).shape[0])
                for i in range(B)]
    Tmax = max(t_counts) if t_counts else 0
    pred_flat = pred_masks.reshape(B, N, HW)
    if Tmax == 0:
        return pred_flat, None, None, t_counts

    tgt_rows, prob_rows = [], []
    for i in range(B):
        Ti = t_counts[i]
        if Ti == 0:
            tgt_rows.append(jnp.zeros((Tmax, HW), jnp.float32))
            prob_rows.append(jnp.zeros((Tmax, N), jnp.float32))
            continue
        tgt_ids = np.asarray(jax.device_get(targets[i]['labels']))
        tgt_flat = _prepare_targets(targets[i], input_shape, H, W, jnp.float32)
        probt = pred_scores[i][:, tgt_ids].T.astype(jnp.float32)     # [Ti, N]
        if Ti < Tmax:
            tgt_flat = jnp.pad(tgt_flat, ((0, Tmax - Ti), (0, 0)))
            probt = jnp.pad(probt, ((0, Tmax - Ti), (0, 0)))
        tgt_rows.append(tgt_flat)
        prob_rows.append(probt)
    return pred_flat, jnp.stack(tgt_rows), jnp.stack(prob_rows), t_counts


def _linear_sum_assignment_maximize(C):
    """Exact maximize-assignment via brute force (tiny matrices)."""
    # TODO(synk): Hungarian (scipy.optimize.linear_sum_assignment) is host-side
    # combinatorial control flow; no Pallas equivalent, done in numpy.
    C = np.asarray(C, dtype=np.float64)
    n, t = C.shape
    best, best_val = None, -np.inf
    if n >= t:
        for perm in itertools.permutations(range(n), t):
            val = sum(C[perm[j], j] for j in range(t))
            if val > best_val:
                best_val, best = val, perm
        rows, cols = np.asarray(best), np.arange(t)
    else:
        for perm in itertools.permutations(range(t), n):
            val = sum(C[i, perm[i]] for i in range(n))
            if val > best_val:
                best_val, best = val, perm
        rows, cols = np.arange(n), np.asarray(best)
    order = np.argsort(rows)
    return rows[order].astype(np.int64), cols[order].astype(np.int64)


def _cost_reference(pred_flat, tgt_flat, prob, alpha=ALPHA, beta=BETA):
    s = 1.0 / (1.0 + np.exp(-np.asarray(pred_flat, np.float64)))
    t = np.asarray(tgt_flat, np.float64)
    num = 2.0 * s @ t.T
    denom = (s * s).sum(-1)[:, None] + (t * t).sum(-1)[None, :]
    score = num / (denom + EPS)
    return (score ** alpha) * (np.asarray(prob, np.float64) ** beta)


def sparse_inst_matcher_v1(outputs, targets, input_shape):
    """Forward pass of SparseInstMatcherV1. Returns list of (row_idx, col_idx) int64 arrays."""
    B = outputs['pred_masks'].shape[0]
    empty = (np.zeros((0,), np.int64), np.zeros((0,), np.int64))
    pred_flat, tgt_b, probT_b, t_counts = _build_batched_inputs(
        outputs, targets, input_shape)
    if tgt_b is None:
        return [empty for _ in range(B)]

    CT = compute_cost_matrices(pred_flat, tgt_b, probT_b)    # one kernel, all images
    CT_host = np.asarray(jax.device_get(CT))                 # single device->host sync

    indices = []
    for i in range(B):
        Ti = t_counts[i]
        if Ti == 0:
            indices.append(empty)
            continue
        C = CT_host[i, :Ti, :].T                             # [N, Ti]
        indices.append(_linear_sum_assignment_maximize(C))
    return indices


# ------------------------------- demo ----------------------------------------
if __name__ == "__main__":
    key = jax.random.PRNGKey(0)
    B, N, H, W = 2, 8, 16, 16
    num_classes = 4
    input_shape = (64, 64)
    k1, k2, k3, k4, k5, k6 = jax.random.split(key, 6)

    pred_masks = jax.random.normal(k1, (B, N, H, W), jnp.float32)
    pred_logits = jax.random.normal(k2, (B, N, num_classes), jnp.float32)
    outputs = {'pred_masks': pred_masks, 'pred_logits': pred_logits}

    # batch 0: 3 targets at original resolution (48, 56); batch 1: 2 targets at (64, 40)
    m0 = (jax.random.uniform(k3, (3, 48, 56)) > 0.5).astype(jnp.float32)
    l0 = jax.random.randint(k4, (3,), 0, num_classes)
    m1 = (jax.random.uniform(k5, (2, 64, 40)) > 0.5).astype(jnp.float32)
    l1 = jax.random.randint(k6, (2,), 0, num_classes)
    targets = [{'labels': l0, 'masks': m0}, {'labels': l1, 'masks': m1}]

    # Run the batched Pallas cost kernel once explicitly, block, and validate.
    pred_flat, tgt_b, probT_b, t_counts = _build_batched_inputs(
        outputs, targets, input_shape)
    CT_dev = compute_cost_matrices(pred_flat, tgt_b, probT_b)
    jax.block_until_ready(CT_dev)
    CT_host = np.asarray(jax.device_get(CT_dev))
    for i in range(B):
        Ti = t_counts[i]
        if Ti == 0:
            continue
        C_ref = _cost_reference(np.asarray(jax.device_get(pred_flat[i])),
                                np.asarray(jax.device_get(tgt_b[i, :Ti])),
                                np.asarray(jax.device_get(probT_b[i, :Ti])).T)
        assert np.allclose(CT_host[i, :Ti, :].T, C_ref, rtol=2e-2, atol=2e-2), \
            f"Pallas cost matrix mismatch vs reference (batch {i})"

    # Full forward pass (matches SparseInstMatcherV1.forward semantics).
    indices = sparse_inst_matcher_v1(outputs, targets, input_shape)
    assert len(indices) == B
    for rows, cols in indices:
        assert rows.dtype == np.int64 and cols.dtype == np.int64
        assert rows.shape == cols.shape

    print("KERNEL_OK")
</pallas_src>

<mosaic_0001>
module attributes {stable_mosaic.version = 11 : i64} {
  func.func @_cost_kernel(%arg0: i32, %arg1: i32, %arg2: memref<1x128x256xf32, #tpu.memory_space<vmem>>, %arg3: memref<1x8x256xf32, #tpu.memory_space<vmem>>, %arg4: memref<1x8x128xf32, #tpu.memory_space<vmem>>, %arg5: memref<1x8x128xf32, #tpu.memory_space<vmem>>, %arg6: memref<8x128xf32, #tpu.memory_space<vmem>>, %arg7: memref<1x128xf32, #tpu.memory_space<vmem>>, %arg8: memref<8x1xf32, #tpu.memory_space<vmem>>) attributes {dimension_semantics = [#tpu.dimension_semantics<parallel>, #tpu.dimension_semantics<arbitrary>], iteration_bounds = array<i64: 2, 1>, scalar_prefetch = 0 : i64, scratch_operands = 3 : i64, tpu.core_type = #tpu.core_type<tc>, window_params = [{transform_indices = @transform_0, window_bounds = array<i64: 1, 128, 256>}, {transform_indices = @transform_1, window_bounds = array<i64: 1, 8, 256>}, {transform_indices = @transform_2, window_bounds = array<i64: 1, 8, 128>}, {transform_indices = @transform_3, window_bounds = array<i64: 1, 8, 128>}]} {
    %c0_i32 = arith.constant 0 : i32
    %0 = arith.cmpi eq, %arg1, %c0_i32 : i32
    %1 = arith.extui %0 : i1 to i32
    %c0_i32_0 = arith.constant 0 : i32
    %2 = arith.cmpi ne, %1, %c0_i32_0 : i32
    scf.if %2 {
      %cst_25 = arith.constant 0.000000e+00 : f32
      %35 = vector.broadcast %cst_25 : f32 to vector<8x128xf32>
      %c0_26 = arith.constant 0 : index
      %c0_27 = arith.constant 0 : index
      %36 = vector.load %arg6[%c0_26, %c0_27] : memref<8x128xf32, #tpu.memory_space<vmem>>, vector<8x128xf32>
      tpu.vector_store %arg6[%c0_26, %c0_27], %35 {strides = array<i32>} : memref<8x128xf32, #tpu.memory_space<vmem>>, vector<8x128xf32>,
      %cst_28 = arith.constant 0.000000e+00 : f32
      %37 = vector.broadcast %cst_28 : f32 to vector<1x128xf32>
      %c0_29 = arith.constant 0 : index
      %c0_30 = arith.constant 0 : index
      %38 = vector.load %arg7[%c0_29, %c0_30] : memref<1x128xf32, #tpu.memory_space<vmem>>, vector<1x128xf32>
      tpu.vector_store %arg7[%c0_29, %c0_30], %37 {strides = array<i32>} : memref<1x128xf32, #tpu.memory_space<vmem>>, vector<1x128xf32>,
      %cst_31 = arith.constant 0.000000e+00 : f32
      %39 = vector.broadcast %cst_31 : f32 to vector<8x1xf32>
      %c0_32 = arith.constant 0 : index
      %c0_33 = arith.constant 0 : index
      %40 = vector.load %arg8[%c0_32, %c0_33] : memref<8x1xf32, #tpu.memory_space<vmem>>, vector<8x1xf32>
      tpu.vector_store %arg8[%c0_32, %c0_33], %39 {strides = array<i32>} : memref<8x1xf32, #tpu.memory_space<vmem>>, vector<8x1xf32>,
    } else {
    }
    %c0 = arith.constant 0 : index
    %c0_1 = arith.constant 0 : index
    %c0_2 = arith.constant 0 : index
    %3 = vector.load %arg2[%c0, %c0_1, %c0_2] : memref<1x128x256xf32, #tpu.memory_space<vmem>>, vector<1x128x256xf32>
    %4 = vector.shape_cast %3 : vector<1x128x256xf32> to vector<128x256xf32>
    %cst = arith.constant 0.000000e+00 : f32
    %5 = vector.broadcast %cst : f32 to vector<128x256xf32>
    %6 = arith.subf %5, %4 : vector<128x256xf32>
    %7 = math.exp %6 : vector<128x256xf32>
    %cst_3 = arith.constant 1.000000e+00 : f32
    %8 = vector.broadcast %cst_3 : f32 to vector<128x256xf32>
    %9 = arith.addf %8, %7 : vector<128x256xf32>
    %10 = tpu.reciprocal %9 {approx = true} : vector<128x256xf32> -> vector<128x256xf32>
    %c0_4 = arith.constant 0 : index
    %c0_5 = arith.constant 0 : index
    %c0_6 = arith.constant 0 : index
    %11 = vector.load %arg3[%c0_4, %c0_5, %c0_6] : memref<1x8x256xf32, #tpu.memory_space<vmem>>, vector<1x8x256xf32>
    %12 = vector.shape_cast %11 : vector<1x8x256xf32> to vector<8x256xf32>
    %13 = arith.truncf %10 : vector<128x256xf32> to vector<128x256xbf16>
    %14 = arith.truncf %12 : vector<8x256xf32> to vector<8x256xbf16>
    %c0_7 = arith.constant 0 : index
    %c0_8 = arith.constant 0 : index
    %15 = vector.load %arg6[%c0_7, %c0_8] : memref<8x128xf32, #tpu.memory_space<vmem>>, vector<8x128xf32>
    %cst_9 = arith.constant dense<0.000000e+00> : vector<8x128xf32>
    %16 = tpu.matmul %14, %13, %cst_9 {dimension_numbers = #tpu.dot_dimension_numbers<[1], [1], [0], [0], [0, 0, 1, 0], [], []>} : vector<8x256xbf16>, vector<128x256xbf16>, vector<8x128xf32> -> vector<8x128xf32>
    %17 = arith.addf %15, %16 : vector<8x128xf32>
    %c0_10 = arith.constant 0 : index
    %c0_11 = arith.constant 0 : index
    %18 = vector.load %arg6[%c0_10, %c0_11] : memref<8x128xf32, #tpu.memory_space<vmem>>, vector<8x128xf32>
    tpu.vector_store %arg6[%c0_10, %c0_11], %17 {strides = array<i32>} : memref<8x128xf32, #tpu.memory_space<vmem>>, vector<8x128xf32>,
    %19 = arith.mulf %10, %10 : vector<128x256xf32>
    %20 = arith.truncf %19 : vector<128x256xf32> to vector<128x256xbf16>
    %cst_12 = arith.constant 1.000000e+00 : bf16
    %21 = vector.broadcast %cst_12 : bf16 to vector<1x256xbf16>
    %c0_13 = arith.constant 0 : index
    %c0_14 = arith.constant 0 : index
    %22 = vector.load %arg7[%c0_13, %c0_14] : memref<1x128xf32, #tpu.memory_space<vmem>>, vector<1x128xf32>
    %cst_15 = arith.constant dense<0.000000e+00> : vector<1x128xf32>
    %23 = tpu.matmul %21, %20, %cst_15 {dimension_numbers = #tpu.dot_dimension_numbers<[1], [1], [0], [0], [0, 0, 1, 0], [], []>} : vector<1x256xbf16>, vector<128x256xbf16>, vector<1x128xf32> -> vector<1x128xf32>
    %24 = arith.addf %22, %23 : vector<1x128xf32>
    %c0_16 = arith.constant 0 : index
    %c0_17 = arith.constant 0 : index
    %25 = vector.load %arg7[%c0_16, %c0_17] : memref<1x128xf32, #tpu.memory_space<vmem>>, vector<1x128xf32>
    tpu.vector_store %arg7[%c0_16, %c0_17], %24 {strides = array<i32>} : memref<1x128xf32, #tpu.memory_space<vmem>>, vector<1x128xf32>,
    %c0_18 = arith.constant 0 : index
    %c0_19 = arith.constant 0 : index
    %26 = vector.load %arg8[%c0_18, %c0_19] : memref<8x1xf32, #tpu.memory_space<vmem>>, vector<8x1xf32>
    %27 = arith.mulf %12, %12 : vector<8x256xf32>
    %cst_20 = arith.constant dense<0.000000e+00> : vector<8xf32>
    %28 = vector.multi_reduction <add>, %27, %cst_20 [1] : vector<8x256xf32> to vector<8xf32>
    %29 = vector.shape_cast %28 : vector<8xf32> to vector<8x1xf32>
    %30 = arith.addf %26, %29 : vector<8x1xf32>
    %c0_21 = arith.constant 0 : index
    %c0_22 = arith.constant 0 : index
    %31 = vector.load %arg8[%c0_21, %c0_22] : memref<8x1xf32, #tpu.memory_space<vmem>>, vector<8x1xf32>
    tpu.vector_store %arg8[%c0_21, %c0_22], %30 {strides = array<i32>} : memref<8x1xf32, #tpu.memory_space<vmem>>, vector<8x1xf32>,
    %c0_i32_23 = arith.constant 0 : i32
    %32 = arith.cmpi eq, %arg1, %c0_i32_23 : i32
    %33 = arith.extui %32 : i1 to i32
    %c0_i32_24 = arith.constant 0 : i32
    %34 = arith.cmpi ne, %33, %c0_i32_24 : i32
    scf.if %34 {
      %c0_25 = arith.constant 0 : index
      %c0_26 = arith.constant 0 : index
      %35 = vector.load %arg7[%c0_25, %c0_26] : memref<1x128xf32, #tpu.memory_space<vmem>>, vector<1x128xf32>
      %c0_27 = arith.constant 0 : index
      %c0_28 = arith.constant 0 : index
      %36 = vector.load %arg8[%c0_27, %c0_28] : memref<8x1xf32, #tpu.memory_space<vmem>>, vector<8x1xf32>
      %37 = vector.broadcast %35 : vector<1x128xf32> to vector<8x128xf32>
      %38 = vector.broadcast %36 : vector<8x1xf32> to vector<8x128xf32>
      %39 = arith.addf %37, %38 : vector<8x128xf32>
      %cst_29 = arith.constant 9.99999974E-5 : f32
      %40 = vector.broadcast %cst_29 : f32 to vector<8x128xf32>
      %41 = arith.addf %39, %40 : vector<8x128xf32>
      %c0_30 = arith.constant 0 : index
      %c0_31 = arith.constant 0 : index
      %42 = vector.load %arg6[%c0_30, %c0_31] : memref<8x128xf32, #tpu.memory_space<vmem>>, vector<8x128xf32>
      %cst_32 = arith.constant 2.000000e+00 : f32
      %43 = vector.broadcast %cst_32 : f32 to vector<8x128xf32>
      %44 = arith.mulf %43, %42 : vector<8x128xf32>
      %45 = tpu.reciprocal %41 {approx = true} : vector<8x128xf32> -> vector<8x128xf32>
      %46 = arith.mulf %44, %45 : vector<8x128xf32>
      %c0_33 = arith.constant 0 : index
      %c0_34 = arith.constant 0 : index
      %c0_35 = arith.constant 0 : index
      %47 = vector.load %arg4[%c0_33, %c0_34, %c0_35] : memref<1x8x128xf32, #tpu.memory_space<vmem>>, vector<1x8x128xf32>
      %48 = vector.shape_cast %47 : vector<1x8x128xf32> to vector<8x128xf32>
      %49 = math.log %46 : vector<8x128xf32>
      %cst_36 = arith.constant 8.000000e-01 : f32
      %50 = vector.broadcast %cst_36 : f32 to vector<8x128xf32>
      %51 = arith.mulf %50, %49 : vector<8x128xf32>
      %52 = math.log %48 : vector<8x128xf32>
      %cst_37 = arith.constant 2.000000e-01 : f32
      %53 = vector.broadcast %cst_37 : f32 to vector<8x128xf32>
      %54 = arith.mulf %53, %52 : vector<8x128xf32>
      %55 = arith.addf %51, %54 : vector<8x128xf32>
      %56 = math.exp %55 : vector<8x128xf32>
      %c0_38 = arith.constant 0 : index
      %c0_39 = arith.constant 0 : index
      %c0_40 = arith.constant 0 : index
      %57 = vector.load %arg5[%c0_38, %c0_39, %c0_40] : memref<1x8x128xf32, #tpu.memory_space<vmem>>, vector<1x8x128xf32>
      %58 = vector.shape_cast %57 : vector<1x8x128xf32> to vector<8x128xf32>
      %59 = vector.shape_cast %56 : vector<8x128xf32> to vector<1x8x128xf32>
      tpu.vector_store %arg5[%c0_38, %c0_39, %c0_40], %59 {strides = array<i32>} : memref<1x8x128xf32, #tpu.memory_space<vmem>>, vector<1x8x128xf32>,
    } else {
    }
    return
  }
  func.func @transform_0(%arg0: i32, %arg1: i32) -> (i32, i32, i32) {
    %c0_i32 = arith.constant 0 : i32
    %c0_i32_0 = arith.constant 0 : i32
    return %arg0, %c0_i32, %arg1 : i32, i32, i32
  }
  func.func @transform_1(%arg0: i32, %arg1: i32) -> (i32, i32, i32) {
    %c0_i32 = arith.constant 0 : i32
    %c0_i32_0 = arith.constant 0 : i32
    return %arg0, %c0_i32, %arg1 : i32, i32, i32
  }
  func.func @transform_2(%arg0: i32, %arg1: i32) -> (i32, i32, i32) {
    %c0_i32 = arith.constant 0 : i32
    %c0_i32_0 = arith.constant 0 : i32
    %c0_i32_1 = arith.constant 0 : i32
    return %arg0, %c0_i32, %c0_i32_0 : i32, i32, i32
  }
  func.func @transform_3(%arg0: i32, %arg1: i32) -> (i32, i32, i32) {
    %c0_i32 = arith.constant 0 : i32
    %c0_i32_0 = arith.constant 0 : i32
    %c0_i32_1 = arith.constant 0 : i32
    return %arg0, %c0_i32, %c0_i32_0 : i32, i32, i32
  }
}

</mosaic_0001>

<bundles_post_ra>
// kernel: tpu_custom_call.1
= control target key start
LH: loop header
LB: loop body
LE: loop exit
PB: predicated region body
PF: predicated region fallthrough
CT: control target
= control target key end

     0   :  { %s1454_s0 = inlined_call_operand.hbm [shape: f32[2,128,256], index: 0, kind: input, shape index: {}]   ;;  %s1455_s1 = inlined_call_operand.hbm [shape: f32[2,8,256], index: 1, kind: input, shape index: {}]   ;;  %s1456_s2 = inlined_call_operand.hbm [shape: f32[2,8,128], index: 2, kind: input, shape index: {}]   ;;  %s1457_s3 = inlined_call_operand.hbm [shape: f32[2,8,128], index: 3, kind: output, shape index: {}]  }
   0x1   :  { %1463 = sst [smem:[#allocation20_spill]] %s1455_s1 }
   0x2   :  { %8 = vsyncpa [#allocation6], 0 }
   0x3   :  { %10 = vsyncpa [#allocation6 + $0x1], 0 }
   0x4   :  { %11 = vsyncpa [#allocation9], 0 }
   0x5   :  { %13 = vsyncpa [#allocation9 + $0x1], 0 }
   0x6   :  { %14 = vsyncpa [#allocation7], 0 }
   0x7   :  { %16 = vsyncpa [#allocation7 + $0x1], 0  ;;  %s1239_s12 = smov 0   ;;  %s1241_s13 = smov 0  }
   0x8   :  { %s1243_s14 = smov 0   ;;  %s1245_s15 = smov 0  }
   0x9   :  { %s1247_s16 = smov 0   ;;  %s1249_s17 = smov 0  }
   0xa LB: > { %1464 = sst [smem:[#allocation15_spill]] %s1200_s14  ;;  %s1270_s18 = sadd.s32 4294967295, %s1212_s17   ;;  %s1212_s17 = sphi %s1249_s17, %s22_s17   ;;  %s1208_s16 = sphi %s1247_s16, %s1484_s16   ;;  %s1204_s15 = sphi %s1245_s15, %s1483_s15   ;;  %s1200_s14 = sphi %s1243_s14, %s1479_s14   ;;  %s1196_s13 = sphi %s1241_s13, %s1482_s13   ;;  %s1192_s12 = sphi %s1239_s12, %s1481_s12  }
   0xb   : > { %1465 = sst [smem:[#allocation16_spill]] %s1212_s17  ;;  %s799_s19 = sadd.s32 4294967294, %s1212_s17  }
   0xc   : > { %s34_s20 = sadd.s32 1, %s1208_s16  ;;  %s43_s21 = sadd.s32 1, %s1200_s14 }
   0xd   : > { %p36_p0 = scmp.ge.s32.totalorder %s34_s20, 2  ;;  %p50_p1 = scmp.ne.s32.totalorder %s1200_s14, %s1196_s13 }
   0xe   : > { %p51_p2 = scmp.eq.s32.totalorder %s1212_s17, 0  ;;  %p56_p3 = scmp.ne.s32.totalorder %s1196_s13, %s1192_s12 }
   0xf   : > { %s1486_s20 = smov (%p36_p0, %s34_s20), 0  ;;  %p57_p5 = scmp.eq.s32.totalorder %s1270_s18, 0 }
  0x10   : > { %1466 = sst [smem:[#allocation17_spill]] %s1486_s20  ;;  %p1282_p4 = por %p51_p2, %p50_p1 }
  0x11   : > { %s38_s23 = ssub.s32 %s1208_s16, %s1486_s20  ;;  %p134_p6 = scmp.eq.s32.totalorder %s1270_s18, 1 }
  0x12   : > { %p41_p7 = scmp.eq.s32.totalorder %s38_s23, 0  ;;  %p1290_p8 = por %p57_p5, %p56_p3 }
  0x13   : > { %p1294_p9 = por %p134_p6, %p50_p1  ;;  %p140_p10 = scmp.eq.s32.totalorder %s799_s19, 1 }
  0x14   : > { %s1299_s26 = scalar_select %p41_p7, %s1200_s14, %s43_s21  }
  0x15   : > { %p1301_p11 = por %p140_p10, %p56_p3  ;;  %p801_p12 = scmp.ge.s32.totalorder %s1212_s17, 2 }
  0x16   : > { %1470 = sst [smem:[#allocation18_spill]] %s1299_s26  ;;  %p843_p13 = scmp.lt.s32.totalorder %s1212_s17, 2 }
  0x17   : > { %s1471_s27 = scalar_select %p1301_p11, 1, 0 }
  0x18   : > { %s1308_s28 = sand.u32 1, %s1200_s14   ;;  %s184_s29 = sand.u32 1, %s1212_s17  }
  0x19   : > { %1472 = sst [smem:[#allocation19_spill]] %s1471_s27  ;;  %s805_s30 = sshll.u32 %s1308_s28, 4 }
  0x1a   : > { %p1314_p0 = pnand %p843_p13, %p1282_p4  ;;  %s820_s5 = sshll.u32 %s1208_s16, 4 }
  0x1b   : > { %s1474_s1 = sld [smem:[#allocation20_spill]]  ;;  %s188_s10 = scalar_lea.vmem [#allocation8], %s805_s30 }
  0x1c   : > { %s199_s11 = sshll.u32 %s188_s10, 4  ;;  %s185_s19 = scalar_lea.sflag [#allocation9], %s184_s29  ;;  %s200_s11 = int_to_ptr.vmem [resolvable:$true] %s199_s11 }
  0x1d   : > { %p810_p1 = scmp.ge.s32.totalorder %s1212_s17, 1  ;;  %p223_p2 = scmp.lt.s32.totalorder %s1212_s17, 3 }
  0x1e   : > { %s802_s22 = sshll.u32 %s1308_s28, 8  ;;  %s819_s23 = sshll.u32 %s1208_s16, 8 }
  0x1f   : > { %p1326_p3 = pnand %p810_p1, %p223_p2  ;;  %s171_s6 = scalar_lea.hbm %s1454_s0, %s819_s23 }
  0x20   : > { %s172_s7 = sshll.u32 %s171_s6, 4  ;;  %s1214_s10 = smov 256   ;;  %s173_s7 = int_to_ptr.hbm [resolvable:$true] %s172_s7 }
  0x21   : > { %s195_s8 = scalar_lea.hbm %s1474_s1, %s820_s5  ;;  %s808_s1 = sshll.u32 %s1308_s28, 3 }
  0x22   : > { %s197_s9 = sshll.u32 %s195_s8, 4  ;;  %s164_s8 = scalar_lea.vmem [#allocation5], %s802_s22  ;;  %s198_s9 = int_to_ptr.hbm [resolvable:$true] %s197_s9 }
  0x23   : > { %835 = dma.hbm_to_vmem [thread:$0]  (!%p1314_p0), %s198_s9, 256, %s200_s11, %s185_s19  }
  0x24   : > { %s174_s29 = sshll.u32 %s164_s8, 4  ;;  %s161_s9 = scalar_lea.sflag [#allocation6], %s1308_s28  ;;  %s175_s29 = int_to_ptr.vmem [resolvable:$true] %s174_s29 }
  0x25   : > { %s1215_s11 = smov 16   ;;  %s809_s20 = sshll.u32 %s1208_s16, 3 }
  0x26   : > { %832 = dma.hbm_to_vmem [thread:$0]  (!%p1314_p0), %s173_s7, 4096, %s175_s29, %s161_s9, %s1214_s10, %s1214_s10, %s1215_s11  }
  0x27   : > { %s214_s17 = scalar_lea.hbm %s1456_s2, %s809_s20  ;;  %s210_s5 = scalar_lea.vmem [#allocation10], %s808_s1 }
  0x28   : > { %s216_s27 = sshll.u32 %s214_s17, 4  ;;  %s218_s23 = sshll.u32 %s210_s5, 4  ;;  %s217_s27 = int_to_ptr.hbm [resolvable:$true] %s216_s27  ;;  %s219_s23 = int_to_ptr.vmem [resolvable:$true] %s218_s23 }
  0x29   : > { %838 = dma.hbm_to_vmem [thread:$0]  (!%p1314_p0), %s217_s27, 128, %s219_s23, %s185_s19  }
  0x2a   : > { %227 = sbr.rel (%p1326_p3) target bundleno = 335 (0x14f), region = 32  ;;  %s1348_s22 = sand.u32 (!%p1326_p3), 1, %s1196_s13  }
  0x2b   : > { %s811_s28 = sshll.u32 (!%p1326_p3), %s1348_s22, 8  ;;  %s230_s30 = scalar_lea.sflag (!%p1326_p3), [#allocation6], %s1348_s22 }
  0x2c   : > { %s1352_s14 = scalar_lea.vmem (!%p1326_p3), [#allocation5], %s811_s28 }
  0x2f   : > { %1179 = dma.done.wait (%p1290_p8), %s230_s30, 4096  }
  0x30   : > { %1181 = vsyncadd (%p1290_p8), %s230_s30, 4294963200  ;;  %s239_s1 = sand.u32 1, %s1270_s18   ;;  %s812_s17 = sshll.u32 %s1348_s22, 4 }
  0x31   : > { %s240_s20 = scalar_lea.sflag [#allocation9], %s239_s1  ;;  %s243_s26 = scalar_lea.vmem [#allocation8], %s812_s17 }
  0x32   : > { %1183 = dma.done.wait (%p1290_p8), %s240_s20, 384  }
  0x33   : > { %1185 = vsyncadd (%p1290_p8), %s240_s20, 4294966912  ;;  %v1364_v0 = vld [vmem:[%s243_s26] sm:$0xff]  ;;  %v1366_v1 = vld [vmem:[%s243_s26 + $0x8] sm:$0xff]  ;;  %vm296_vm0 = vcmask 7168   ;;  %s813_s18 = sshll.u32 %s1348_s22, 3  ;;  %s816_s27 = sshll.u32 %s1204_s15, 3 }
  0x34   : > { %v326_v2 = vld [vmem:[%s1352_s14 + $0xe0] sm:$0xff]  ;;  %v617_v3 = vmul.f32 %v1364_v0, %v1364_v0  ;;  %v618_v4 = vmul.f32 %v1366_v1, %v1366_v1  ;;  %v328_v5 = vld [vmem:[%s1352_s14 + $0xf0] sm:$0xff]  ;;  %v327_v7 = vld [vmem:[%s1352_s14 + $0xe8] sm:$0xff]  ;;  %s253_s24 = scalar_lea.vmem [#allocation10], %s813_s18  ;;  %s666_s21 = scalar_lea.hbm %s1457_s3, %s816_s27 }
  0x35   : > { %v358_v6 = vsub.f32 0.0, %v326_v2  ;;  %v329_v8 = vld [vmem:[%s1352_s14 + $0xf8] sm:$0xff]  ;;  %v360_v9 = vsub.f32 0.0, %v328_v5  ;;  %v359_v10 = vsub.f32 0.0, %v327_v7  ;;  %v322_v12 = vld [vmem:[%s1352_s14 + $0xc0] sm:$0xff]  ;;  %v324_v13 = vld [vmem:[%s1352_s14 + $0xd0] sm:$0xff] }
  0x36   : > { %v361_v11 = vsub.f32 0.0, %v329_v8  ;;  %v323_v14 = vld [vmem:[%s1352_s14 + $0xc8] sm:$0xff]  ;;  %v619_v15 = vadd.f32 %v618_v4, %v617_v3  ;;  %v354_v17 = vsub.f32 0.0, %v322_v12  ;;  %v356_v18 = vsub.f32 0.0, %v324_v13  ;;  %v325_v19 = vld [vmem:[%s1352_s14 + $0xd8] sm:$0xff]  ;;  %v318_v20 = vld [vmem:[%s1352_s14 + $0xa0] sm:$0xff] }
  0x37   : > { %v418_v16 = vmul.f32 1.442695, %v358_v6  ;;  %v422_v21 = vmul.f32 1.442695, %v360_v9  ;;  %v420_v22 = vmul.f32 1.442695, %v359_v10 }
  0x38   : > { %v424_v23 = vmul.f32 1.442695, %v361_v11  ;;  %620 = vadd.xlane.f32.xlu0 %v619_v15  ;;  %v410_v24 = vmul.f32 1.442695, %v354_v17  ;;  %v355_v25 = vsub.f32 0.0, %v323_v14  ;;  %v357_v27 = vsub.f32 0.0, %v325_v19 }
  0x39   : > { %900 = vpow2.f32 %v418_v16  ;;  %v414_v26 = vmul.f32 1.442695, %v356_v18  ;;  %v350_v28 = vsub.f32 0.0, %v318_v20  ;;  %v320_v33 = vld [vmem:[%s1352_s14 + $0xb0] sm:$0xff]  ;;  %v319_v34 = vld [vmem:[%s1352_s14 + $0xa8] sm:$0xff]  ;;  %v321_v39 = vld [vmem:[%s1352_s14 + $0xb8] sm:$0xff] }
  0x3a   : > { %902 = vpow2.f32 %v422_v21  ;;  %v412_v29 = vmul.f32 1.442695, %v355_v25  ;;  %v416_v30 = vmul.f32 1.442695, %v357_v27  ;;  %v352_v42 = vsub.f32 0.0, %v320_v33  ;;  %v314_v44 = vld [vmem:[%s1352_s14 + $0x80] sm:$0xff] }
  0x3b   : > { %904 = vpow2.f32 %v420_v22  ;;  %v402_v31 = vmul.f32 1.442695, %v350_v28  ;;  %v351_v43 = vsub.f32 0.0, %v319_v34  ;;  %v353_v49 = vsub.f32 0.0, %v321_v39  ;;  %v316_v50 = vld [vmem:[%s1352_s14 + $0x90] sm:$0xff]  ;;  %v315_v51 = vld [vmem:[%s1352_s14 + $0x88] sm:$0xff] }
  0x3c   : > { %906 = vpow2.f32 %v424_v23  ;;  %v346_v54 = vsub.f32 0.0, %v314_v44  ;;  %v317_v55 = vld [vmem:[%s1352_s14 + $0x98] sm:$0xff]  ;;  %v406_v58 = vmul.f32 1.442695, %v352_v42  ;;  %v310_v60 = vld [vmem:[%s1352_s14 + $0x60] sm:$0xff]  ;;  %v348_v63 = vsub.f32 0.0, %v316_v50 }
  0x3d   : > { %908 = vpow2.f32 %v410_v24  ;;  %v404_v59 = vmul.f32 1.442695, %v351_v43  ;;  %v347_v2 = vsub.f32 0.0, %v315_v51  ;;  %v312_v3 = vld [vmem:[%s1352_s14 + $0x70] sm:$0xff]  ;;  %v408_v6 = vmul.f32 1.442695, %v353_v49 }
  0x3e   : > { %910 = vpow2.f32 %v414_v26  ;;  %v349_v7 = vsub.f32 0.0, %v317_v55  ;;  %v394_v10 = vmul.f32 1.442695, %v346_v54  ;;  %v342_v11 = vsub.f32 0.0, %v310_v60  ;;  %v313_v39 = vld [vmem:[%s1352_s14 + $0x78] sm:$0xff]  ;;  %v306_v43 = vld [vmem:[%s1352_s14 + $0x40] sm:$0xff] }
  0x3f   : > { %v901_v32 = vpop.eup %900  ;;  %912 = vpow2.f32 %v412_v29  ;;  %v344_v15 = vsub.f32 0.0, %v312_v3  ;;  %v398_v18 = vmul.f32 1.442695, %v348_v63  ;;  %v396_v19 = vmul.f32 1.442695, %v347_v2  ;;  %v309_v63 = vld [vmem:[%s1352_s14 + $0x58] sm:$0xff] }
  0x40   : > { %v903_v35 = vpop.eup %902  ;;  %v454_v36 = vadd.f32 1.0, %v901_v32  ;;  %914 = vpow2.f32 %v416_v30  ;;  %v400_v25 = vmul.f32 1.442695, %v349_v7  ;;  %v386_v26 = vmul.f32 1.442695, %v342_v11  ;;  %v304_v11 = vld [vmem:[%s1352_s14 + $0x30] sm:$0xff] }
  0x41   : > { %v905_v37 = vpop.eup %904  ;;  %v456_v38 = vadd.f32 1.0, %v903_v35  ;;  %916 = vpow2.f32 %v402_v31  ;;  %v390_v35 = vmul.f32 1.442695, %v344_v15  ;;  %v345_v51 = vsub.f32 0.0, %v313_v39  ;;  %s286_s6 = scalar_lea.vmem [#allocation11], %s813_s18  ;;  %s670_s8 = sshll.u32 %s666_s21, 4  ;;  %s671_s8 = int_to_ptr.hbm [resolvable:$true] %s670_s8 }
  0x42   : > { %v907_v40 = vpop.eup %906  ;;  %918 = vrcp.f32 %v454_v36  ;;  %v455_v41 = vadd.f32 1.0, %v905_v37  ;;  %v311_v36 = vld [vmem:[%s1352_s14 + $0x68] sm:$0xff]  ;;  %v338_v55 = vsub.f32 0.0, %v306_v43  ;;  %s668_s7 = sshll.u32 %s286_s6, 4  ;;  %s656_s29 = scalar_lea.sflag [#allocation7], %s1348_s22  ;;  %s669_s7 = int_to_ptr.vmem [resolvable:$true] %s668_s7 }
  0x43   : > { %v909_v45 = vpop.eup %908  ;;  %920 = vrcp.f32 %v456_v38  ;;  %v457_v46 = vadd.f32 1.0, %v907_v40  ;;  %s1140_s9 = sshra.s32 %s671_s8, 4  ;;  %s1146_s5 = scalar_lea.hbm %s1457_s3, 16  ;;  %s1141_s9 = int_to_ptr.hbm [resolvable:$true] %s1140_s9 }
  0x44   : > { %v911_v47 = vpop.eup %910  ;;  %922 = vrcp.f32 %v455_v41  ;;  %v450_v48 = vadd.f32 1.0, %v909_v45  ;;  %s1142_s10 = scalar_lea.hbm %s1141_s9, 8  ;;  %p1147_p7 = scmp.lt.s32.totalorder %s1141_s9, %s1457_s3 }
  0x45   : > { %v913_v52 = vpop.eup %912  ;;  %924 = vrcp.f32 %v457_v46  ;;  %v452_v53 = vadd.f32 1.0, %v911_v47  ;;  %v343_v46 = vsub.f32 0.0, %v311_v36  ;;  %p1143_p4 = scmp.ne.s32.totalorder %s1141_s9, %s1142_s10  ;;  %p1148_p8 = scmp.lt.s32.totalorder %s1146_s5, %s1142_s10 }
  0x46   : > { %v915_v56 = vpop.eup %914  ;;  %926 = vrcp.f32 %v450_v48  ;;  %v451_v57 = vadd.f32 1.0, %v913_v52  ;;  %v308_v52 = vld [vmem:[%s1352_s14 + $0x50] sm:$0xff] }
  0x47   : > { %v917_v61 = vpop.eup %916  ;;  %928 = vrcp.f32 %v452_v53  ;;  %v453_v62 = vadd.f32 1.0, %v915_v56  ;;  %p1144_p5 = pnand %p1143_p4, %p1294_p9  ;;  %p1149_p10 = por %p1148_p8, %p1147_p7 }
  0x48   : > { %v919_v4 = vpop.eup %918  ;;  %930 = vrcp.f32 %v451_v57  ;;  %v446_v5 = vadd.f32 1.0, %v917_v61  ;;  %v388_v61 = vmul.f32 1.442695, %v343_v46 }
  0x49   : > { %v921_v8 = vpop.eup %920  ;;  %v567_v9 = vmul.f32 %v919_v4, %v919_v4  ;;  %932 = vrcp.f32 %v453_v62  ;;  %v340_v62 = vsub.f32 0.0, %v308_v52  ;;  %p1145_p6 = pneg %p1144_p5 }
  0x4a   : > { %v923_v12 = vpop.eup %922  ;;  %v569_v13 = vmul.f32 %v921_v8, %v921_v8  ;;  %934 = vpow2.f32 %v406_v58  ;;  %v506_v14 = vpack.c.bf16 %v921_v8, %v919_v4  ;;  %v307_v58 = vld [vmem:[%s1352_s14 + $0x48] sm:$0xff] }
  0x4b   : > { %v925_v16 = vpop.eup %924  ;;  %v568_v17 = vmul.f32 %v923_v12, %v923_v12  ;;  %936 = vrcp.f32 %v446_v5  ;;  %v392_v5 = vmul.f32 1.442695, %v345_v51  ;;  %p1150_p13 = pnand %p1149_p10, %p1145_p6 }
  0x4c   : > { %v927_v20 = vpop.eup %926  ;;  %v585_v21 = vpack.c.bf16 %v569_v13, %v567_v9  ;;  %v570_v22 = vmul.f32 %v925_v16, %v925_v16  ;;  %938 = vpow2.f32 %v404_v59  ;;  %511 = vmatpush.bf16.xpose.msra.mxu0 %v506_v14  ;;  %v507_v23 = vpack.c.bf16 %v925_v16, %v923_v12 }
  0x4d   : > { %v929_v24 = vpop.eup %928  ;;  %940 = vpow2.f32 %v408_v6  ;;  %v563_v29 = vmul.f32 %v927_v20, %v927_v20  ;;  %v302_v6 = vld [vmem:[%s1352_s14 + $0x20] sm:$0xff]  ;;  %v378_v9 = vmul.f32 1.442695, %v338_v55  ;;  %v341_v14 = vsub.f32 0.0, %v309_v63 }
  0x4e   : > { %v931_v27 = vpop.eup %930  ;;  %588 = vmatpush.bf16.xpose.msra.mxu2 %v585_v21  ;;  %v586_v28 = vpack.c.bf16 %v570_v22, %v568_v17  ;;  %v565_v30 = vmul.f32 %v929_v24, %v929_v24  ;;  %942 = vpow2.f32 %v394_v10  ;;  %524 = vmatpush.bf16.xpose.msra.mxu1 %v507_v23  ;;  %v504_v42 = vpack.c.bf16 %v929_v24, %v927_v20  ;;  %v303_v20 = vld [vmem:[%s1352_s14 + $0x28] sm:$0xff]  ;;  %v298_v55 = vld [vmem:[%s1352_s14] sm:$0xff] }
  0x4f   : > { %v933_v31 = vpop.eup %932  ;;  %944 = vpow2.f32 %v398_v18  ;;  %v564_v33 = vmul.f32 %v931_v27, %v931_v27  ;;  %v339_v10 = vsub.f32 0.0, %v307_v58  ;;  %v382_v18 = vmul.f32 1.442695, %v340_v62 }
  0x50   : > { %v935_v32 = vpop.eup %934  ;;  %601 = vmatpush.bf16.xpose.msra.mxu3 %v586_v28  ;;  %v566_v34 = vmul.f32 %v933_v31, %v933_v31  ;;  %946 = vpow2.f32 %v396_v19  ;;  %v583_v41 = vpack.c.bf16 %v565_v30, %v563_v29  ;;  %v505_v47 = vpack.c.bf16 %v933_v31, %v931_v27 }
  0x51   : > { %v1391_v37 = vpop.eup %936  ;;  %v448_v38 = vadd.f32 1.0, %v935_v32  ;;  %948 = vpow2.f32 %v400_v25  ;;  %v334_v19 = vsub.f32 0.0, %v302_v6  ;;  %v336_v24 = vsub.f32 0.0, %v304_v11  ;;  %v301_v6 = vld [vmem:[%s1352_s14 + $0x18] sm:$0xff] }
  0x52   : > { %v939_v40 = vpop.eup %938  ;;  %950 = vpow2.f32 %v386_v26  ;;  %v584_v49 = vpack.c.bf16 %v566_v34, %v564_v33  ;;  %v559_v3 = vmul.f32 %v1391_v37, %v1391_v37  ;;  %v380_v27 = vmul.f32 1.442695, %v339_v10 }
  0x53   : > { %v941_v44 = vpop.eup %940  ;;  %952 = vrcp.f32 %v448_v38  ;;  %v447_v45 = vadd.f32 1.0, %v939_v40  ;;  %v384_v31 = vmul.f32 1.442695, %v341_v14  ;;  %v335_v32 = vsub.f32 0.0, %v303_v20 }
  0x54   : > { %v943_v48 = vpop.eup %942  ;;  %v449_v50 = vadd.f32 1.0, %v941_v44  ;;  %954 = vpow2.f32 %v390_v35  ;;  %512 = vmatpush.bf16.xpose.msra.mxu0 %v504_v42  ;;  %v370_v36 = vmul.f32 1.442695, %v334_v19  ;;  %v374_v38 = vmul.f32 1.442695, %v336_v24  ;;  %v305_v42 = vld [vmem:[%s1352_s14 + $0x38] sm:$0xff] }
  0x55   : > { %v945_v53 = vpop.eup %944  ;;  %956 = vrcp.f32 %v447_v45  ;;  %v442_v54 = vadd.f32 1.0, %v943_v48  ;;  %v372_v45 = vmul.f32 1.442695, %v335_v32  ;;  %v337_v51 = vsub.f32 0.0, %v305_v42 }
  0x56   : > { %v947_v56 = vpop.eup %946  ;;  %589 = vmatpush.bf16.xpose.msra.mxu2 %v583_v41  ;;  %958 = vrcp.f32 %v449_v50  ;;  %v444_v57 = vadd.f32 1.0, %v945_v53  ;;  %525 = vmatpush.bf16.xpose.msra.mxu1 %v505_v47 }
  0x57   : > { %v949_v59 = vpop.eup %948  ;;  %960 = vrcp.f32 %v442_v54  ;;  %v443_v60 = vadd.f32 1.0, %v947_v56 }
  0x58   : > { %v951_v2 = vpop.eup %950  ;;  %602 = vmatpush.bf16.xpose.msra.mxu3 %v584_v49  ;;  %962 = vrcp.f32 %v444_v57  ;;  %v445_v4 = vadd.f32 1.0, %v949_v59 }
  0x59   : > { %v953_v7 = vpop.eup %952  ;;  %964 = vrcp.f32 %v443_v60  ;;  %v438_v8 = vadd.f32 1.0, %v951_v2  ;;  %v300_v60 = vld [vmem:[%s1352_s14 + $0x10] sm:$0xff] }
  0x5a   : > { %v955_v12 = vpop.eup %954  ;;  %v561_v13 = vmul.f32 %v953_v7, %v953_v7  ;;  %966 = vrcp.f32 %v445_v4  ;;  %v502_v15 = vpack.c.bf16 %v953_v7, %v1391_v37  ;;  %v376_v4 = vmul.f32 1.442695, %v337_v51 }
  0x5b   : > { %v957_v16 = vpop.eup %956  ;;  %v440_v17 = vadd.f32 1.0, %v955_v12  ;;  %968 = vrcp.f32 %v438_v8 }
  0x5c   : > { %v959_v21 = vpop.eup %958  ;;  %v581_v22 = vpack.c.bf16 %v561_v13, %v559_v3  ;;  %v560_v23 = vmul.f32 %v957_v16, %v957_v16  ;;  %970 = vpow2.f32 %v388_v61  ;;  %513 = vmatpush.bf16.xpose.msra.mxu0 %v502_v15  ;;  %v299_v61 = vld [vmem:[%s1352_s14 + $0x8] sm:$0xff] }
  0x5d   : > { %v961_v25 = vpop.eup %960  ;;  %v562_v26 = vmul.f32 %v959_v21, %v959_v21  ;;  %972 = vrcp.f32 %v440_v17  ;;  %v503_v28 = vpack.c.bf16 %v959_v21, %v957_v16  ;;  %v331_v10 = vsub.f32 0.0, %v299_v61 }
  0x5e   : > { %v963_v29 = vpop.eup %962  ;;  %590 = vmatpush.bf16.xpose.msra.mxu2 %v581_v22  ;;  %v555_v30 = vmul.f32 %v961_v25, %v961_v25  ;;  %974 = vpow2.f32 %v392_v5  ;;  %v330_v5 = vsub.f32 0.0, %v298_v55  ;;  %v333_v17 = vsub.f32 0.0, %v301_v6 }
  0x5f   : > { %v965_v33 = vpop.eup %964  ;;  %v582_v34 = vpack.c.bf16 %v562_v26, %v560_v23  ;;  %v557_v35 = vmul.f32 %v963_v29, %v963_v29  ;;  %976 = vpow2.f32 %v378_v9  ;;  %526 = vmatpush.bf16.xpose.msra.mxu1 %v503_v28  ;;  %v500_v46 = vpack.c.bf16 %v963_v29, %v961_v25 }
  0x60   : > { %v967_v37 = vpop.eup %966  ;;  %978 = vpow2.f32 %v382_v18  ;;  %v556_v40 = vmul.f32 %v965_v33, %v965_v33  ;;  %v332_v9 = vsub.f32 0.0, %v300_v60  ;;  %v362_v20 = vmul.f32 1.442695, %v330_v5 }
  0x61   : > { %v969_v39 = vpop.eup %968  ;;  %603 = vmatpush.bf16.xpose.msra.mxu3 %v582_v34  ;;  %v558_v41 = vmul.f32 %v967_v37, %v967_v37  ;;  %980 = vpow2.f32 %v380_v27  ;;  %v579_v44 = vpack.c.bf16 %v557_v35, %v555_v30  ;;  %v501_v49 = vpack.c.bf16 %v967_v37, %v965_v33 }
  0x62   : > { %v971_v43 = vpop.eup %970  ;;  %982 = vpow2.f32 %v384_v31  ;;  %v551_v57 = vmul.f32 %v969_v39, %v969_v39  ;;  %v366_v23 = vmul.f32 1.442695, %v332_v9  ;;  %v364_v26 = vmul.f32 1.442695, %v331_v10 }
  0x63   : > { %v973_v47 = vpop.eup %972  ;;  %v439_v48 = vadd.f32 1.0, %v971_v43  ;;  %984 = vpow2.f32 %v370_v36  ;;  %v580_v53 = vpack.c.bf16 %v558_v41, %v556_v40  ;;  %v368_v30 = vmul.f32 1.442695, %v333_v17 }
  0x64   : > { %v975_v50 = vpop.eup %974  ;;  %986 = vpow2.f32 %v374_v38  ;;  %514 = vmatpush.bf16.xpose.msra.mxu0 %v500_v46  ;;  %v553_v58 = vmul.f32 %v973_v47, %v973_v47  ;;  %v498_v14 = vpack.c.bf16 %v973_v47, %v969_v39  ;;  %v1216_v43 = vmov 0.0  }
  0x65   : > { %v977_v52 = vpop.eup %976  ;;  %v441_v54 = vadd.f32 1.0, %v975_v50  ;;  %988 = vrcp.f32 %v439_v48  ;;  %295 = vst [vmem:[#allocation3] sm:$0x1] %v1216_v43  ;;  %v1218_v17 = vmov 0  }
  0x66   : > { %v979_v56 = vpop.eup %978  ;;  %591 = vmatpush.bf16.xpose.msra.mxu2 %v579_v44  ;;  %v434_v59 = vadd.f32 1.0, %v977_v52  ;;  %990 = vpow2.f32 %v372_v45  ;;  %v577_v12 = vpack.c.bf16 %v553_v58, %v551_v57  ;;  %297 = vst.msk [vmem:[#allocation4] sm:$0xff] %vm296_vm0, %v1216_v43  ;;  %898 = vset.pattern.permute.xlu0 %v1218_v17 }
  0x67   : > { %v981_v62 = vpop.eup %980  ;;  %992 = vrcp.f32 %v441_v54  ;;  %v436_v63 = vadd.f32 1.0, %v979_v56  ;;  %527 = vmatpush.bf16.xpose.msra.mxu1 %v501_v49 }
  0x68   : > { %v983_v2 = vpop.eup %982  ;;  %994 = vrcp.f32 %v434_v59  ;;  %v435_v3 = vadd.f32 1.0, %v981_v62 }
  0x69   : > { %v985_v7 = vpop.eup %984  ;;  %604 = vmatpush.bf16.xpose.msra.mxu3 %v580_v53  ;;  %996 = vrcp.f32 %v436_v63  ;;  %v437_v8 = vadd.f32 1.0, %v983_v2 }
  0x6a   : > { %v987_v11 = vpop.eup %986  ;;  %998 = vrcp.f32 %v435_v3  ;;  %v430_v13 = vadd.f32 1.0, %v985_v7 }
  0x6b   : > { %v989_v15 = vpop.eup %988  ;;  %1000 = vrcp.f32 %v437_v8  ;;  %v432_v16 = vadd.f32 1.0, %v987_v11 }
  0x6c   : > { %v991_v18 = vpop.eup %990  ;;  %v552_v19 = vmul.f32 %v989_v15, %v989_v15  ;;  %1002 = vrcp.f32 %v430_v13  ;;  %515 = vmatpush.bf16.xpose.msra.mxu0 %v498_v14  ;;  %v508_v14 = vpack.c.bf16 %v1364_v0, %v1364_v0 }
  0x6d   : > { %v993_v21 = vpop.eup %992  ;;  %1004 = vrcp.f32 %v432_v16  ;;  %v431_v22 = vadd.f32 1.0, %v991_v18  ;;  %v1217_v16 = vmov 1065369472   ;;  %v616_v18 = vld [vmem:[#allocation4] sm:$0xff] }
  0x6e   : > { %v995_v24 = vpop.eup %994  ;;  %592 = vmatpush.bf16.xpose.msra.mxu2 %v577_v12  ;;  %v554_v25 = vmul.f32 %v993_v21, %v993_v21  ;;  %1006 = vpow2.f32 %v376_v4  ;;  %v499_v27 = vpack.c.bf16 %v993_v21, %v989_v15  ;;  %v509_v15 = vpack.c.bf16 %v1366_v1, %v1366_v1 }
  0x6f   : > { %v997_v28 = vpop.eup %996  ;;  %v547_v29 = vmul.f32 %v995_v24, %v995_v24  ;;  %1008 = vrcp.f32 %v431_v22 }
  0x70   : > { %v999_v31 = vpop.eup %998  ;;  %v578_v32 = vpack.c.bf16 %v554_v25, %v552_v19  ;;  %v549_v33 = vmul.f32 %v997_v28, %v997_v28  ;;  %1010 = vpow2.f32 %v362_v20  ;;  %528 = vmatpush.bf16.xpose.msra.mxu1 %v499_v27  ;;  %v496_v35 = vpack.c.bf16 %v997_v28, %v995_v24  ;;  %v587_v25 = vld [vmem:[#allocation3] sm:$0x1] }
  0x71   : > { %v1001_v34 = vpop.eup %1000  ;;  %1012 = vpow2.f32 %v366_v23  ;;  %v548_v38 = vmul.f32 %v999_v31, %v999_v31 }
  0x72   : > { %v1003_v36 = vpop.eup %1002  ;;  %605 = vmatpush.bf16.xpose.msra.mxu3 %v578_v32  ;;  %v575_v37 = vpack.c.bf16 %v549_v33, %v547_v29  ;;  %v550_v39 = vmul.f32 %v1001_v34, %v1001_v34  ;;  %1014 = vpow2.f32 %v364_v26  ;;  %v497_v42 = vpack.c.bf16 %v1001_v34, %v999_v31 }
  0x73   : > { %v1005_v40 = vpop.eup %1004  ;;  %1016 = vpow2.f32 %v368_v30  ;;  %v543_v48 = vmul.f32 %v1003_v36, %v1003_v36 }
  0x74   : > { %v1007_v41 = vpop.eup %1006  ;;  %516 = vmatpush.bf16.xpose.msra.mxu0 %v496_v35  ;;  %v576_v47 = vpack.c.bf16 %v550_v39, %v548_v38  ;;  %v545_v49 = vmul.f32 %v1005_v40, %v1005_v40  ;;  %v494_v54 = vpack.c.bf16 %v1005_v40, %v1003_v36  ;;  %v644_v36 = vld [vmem:[%s253_s24] sm:$0xff] }
  0x75   : > { %v1009_v44 = vpop.eup %1008  ;;  %v433_v45 = vadd.f32 1.0, %v1007_v41 }
  0x76   : > { %v1011_v46 = vpop.eup %1010  ;;  %593 = vmatpush.bf16.xpose.msra.mxu2 %v575_v37  ;;  %v573_v57 = vpack.c.bf16 %v545_v49, %v543_v48  ;;  %v544_v59 = vmul.f32 %v1009_v44, %v1009_v44 }
  0x77   : > { %v1013_v50 = vpop.eup %1012  ;;  %1018 = vrcp.f32 %v433_v45  ;;  %v426_v51 = vadd.f32 1.0, %v1011_v46 }
  0x78   : > { %v1015_v52 = vpop.eup %1014  ;;  %v428_v53 = vadd.f32 1.0, %v1013_v50  ;;  %529 = vmatpush.bf16.xpose.msra.mxu1 %v497_v42 }
  0x79   : > { %v1017_v55 = vpop.eup %1016  ;;  %1020 = vrcp.f32 %v426_v51  ;;  %v427_v56 = vadd.f32 1.0, %v1015_v52 }
  0x7a   : > { %606 = vmatpush.bf16.xpose.msra.mxu3 %v576_v47  ;;  %1022 = vrcp.f32 %v428_v53  ;;  %v429_v58 = vadd.f32 1.0, %v1017_v55 }
  0x7b   : > { %1024 = vrcp.f32 %v427_v56 }
  0x7c   : > { %1026 = vrcp.f32 %v429_v58  ;;  %517 = vmatpush.bf16.xpose.msra.mxu0 %v494_v54 }
  0x7d   : > { %v1019_v60 = vpop.eup %1018 }
  0x7e   : > { %594 = vmatpush.bf16.xpose.msra.mxu2 %v573_v57  ;;  %v546_v61 = vmul.f32 %v1019_v60, %v1019_v60  ;;  %v495_v62 = vpack.c.bf16 %v1019_v60, %v1009_v44 }
  0x7f   : > { %v1021_v63 = vpop.eup %1020 }
  0x80   : > { %v1023_v2 = vpop.eup %1022  ;;  %v574_v3 = vpack.c.bf16 %v546_v61, %v544_v59  ;;  %v539_v4 = vmul.f32 %v1021_v63, %v1021_v63  ;;  %530 = vmatpush.bf16.xpose.msra.mxu1 %v495_v62 }
  0x81   : > { %v1025_v5 = vpop.eup %1024  ;;  %v541_v6 = vmul.f32 %v1023_v2, %v1023_v2  ;;  %v492_v7 = vpack.c.bf16 %v1023_v2, %v1021_v63 }
  0x82   : > { %v1027_v8 = vpop.eup %1026  ;;  %607 = vmatpush.bf16.xpose.msra.mxu3 %v574_v3  ;;  %v540_v9 = vmul.f32 %v1025_v5, %v1025_v5 }
  0x83   : > { %v571_v10 = vpack.c.bf16 %v541_v6, %v539_v4  ;;  %v542_v11 = vmul.f32 %v1027_v8, %v1027_v8  ;;  %v493_v12 = vpack.c.bf16 %v1027_v8, %v1025_v5 }
  0x84   : > { %518 = vmatpush.bf16.xpose.msra.mxu0 %v492_v7 }
  0x85   : > { %v572_v13 = vpack.c.bf16 %v542_v11, %v540_v9 }
  0x86   : > { %595 = vmatpush.bf16.xpose.msra.mxu2 %v571_v10 }
  0x88   : > { %531 = vmatpush.bf16.xpose.msra.mxu1 %v493_v12 }
  0x8a   : > { %608 = vmatpush.bf16.xpose.msra.mxu3 %v572_v13 }
  0x8b   : > { %519 = vmatmul.bf16.vlgmr.msra.gmra.mxu0 %v508_v14 }
  0x8d   : > { %596 = vmatmul.bf16.vlgmr.msra.gmra.mxu2 %v1217_v16 }
  0x8f   : > { %532 = vmatmul.bf16.vlgmr.msra.gmra.mxu1 %v509_v15 }
  0x91   : > { %609 = vmatmul.bf16.vlgmr.msra.gmra.mxu3 %v1217_v16 }
  0xab   : > { %v621_v19 = vpop.xlane.xlu0 %620 }
  0xac   : > { %v622_v20 = vadd.f32 %v621_v19, %v616_v18 }
  0xae   : > { %624 = vst.msk [vmem:[#allocation4] sm:$0xff] %vm296_vm0, %v622_v20 }
  0xb5   : > { %v629_v21 = vld [vmem:[#allocation4] sm:$0xff] }
  0xb6   : > { %635 = vperm.xlu0 %898, %v629_v21  }
 0x108   : > { %v520_v0 = vpop.f32.mrf.mxu0 }
 0x10c   : > { %v533_v22 = vpop.f32.mrf.mxu1 }
 0x10d   : > { %v534_v35 = vadd.f32 %v533_v22, %v520_v0 }
 0x10f   : > { %v641_v37 = vmul.f32 2.0, %v534_v35 }
 0x110   : > { %v597_v23 = vpop.f32.mrf.mxu2  ;;  %v522_v24 = vpop.f32.mrf.mxu0 }
 0x114   : > { %v610_v1 = vpop.f32.mrf.mxu3  ;;  %v535_v26 = vpop.f32.mrf.mxu1 }
 0x115   : > { %v611_v27 = vadd.f32 %v610_v1, %v597_v23 }
 0x117   : > { %v614_v28 = vadd.f32 %v611_v27, %v587_v25 }
 0x118   : > { %v599_v29 = vpop.f32.mrf.mxu2 }
 0x119   : > { %615 = vst [vmem:[#allocation3] sm:$0x1] %v614_v28 }
 0x11c   : > { %v612_v30 = vpop.f32.mrf.mxu3 }
 0x120   : > { %v899_v31 = vld [vmem:[#allocation3] ss:$0 sm:$0xff] }
 0x128   : > { %v636_v32 = vpop.permute.xlu0 %635 }
 0x129   : > { %v638_v33 = vadd.f32 %v899_v31, %v636_v32 }
 0x12b   : > { %v639_v34 = vadd.f32 0.0001, %v638_v33 }
 0x12d   : > { %1028 = vrcp.f32 %v639_v34 }
 0x12e   : > { %1030 = vlog2.f32 %v644_v36 }
 0x133   : > { %v1029_v38 = vpop.eup %1028 }
 0x134   : > { %v643_v39 = vmul.f32 %v1029_v38, %v641_v37  ;;  %v1031_v40 = vpop.eup %1030 }
 0x135   : > { %v649_v41 = vmul.f32 0.6931472, %v1031_v40 }
 0x136   : > { %1032 = vlog2.f32 %v643_v39 }
 0x137   : > { %v650_v44 = vmul.f32 0.2, %v649_v41 }
 0x13c   : > { %v1033_v42 = vpop.eup %1032 }
 0x13d   : > { %v646_v43 = vmul.f32 0.6931472, %v1033_v42 }
 0x13f   : > { %v647_v45 = vmul.f32 0.8, %v646_v43 }
 0x141   : > { %v651_v46 = vadd.f32 %v650_v44, %v647_v45 }
 0x143   : > { %v652_v47 = vmul.f32 1.442695, %v651_v46 }
 0x145   : > { %1034 = vpow2.f32 %v652_v47 }
 0x14b   : > { %v1035_v48 = vpop.eup %1034 }
 0x14c   : > { %654 = vst [vmem:[%s286_s6] sm:$0xff] %v1035_v48 }
 0x14d   : > { %1153 = shalt.err (!%p1150_p13)
}
 0x14e   : > { %827 = dma.vmem_to_hbm [thread:$0]  (%p1294_p9), %s669_s7, 128, %s671_s8, %s656_s29  }
 0x14f PF: > { %s1477_s30 = sld [smem:[#allocation16_spill]]  ;;  %s682_s14 = sand.u32 1, %s1192_s12  }
 0x150   : > { %p840_p0 = pnand %p801_p12, %p1301_p11  ;;  %s683_s1 = scalar_lea.sflag [#allocation7], %s682_s14 }
 0x152   : > { %p841_p1 = pneg %p840_p0 }
 0x154   : > { %1187 = dma.done.wait (%p841_p1), %s683_s1, 128  }
 0x155   : > { %1189 = vsyncadd (%p841_p1), %s683_s1, 4294967168  ;;  %s22_s17 = sadd.s32 1, %s1477_s30   ;;  %s1478_s20 = sld [smem:[#allocation15_spill]] }
 0x156   : > { %p19_p2 = scmp.ge.s32.totalorder %s22_s17, 4   ;;  %s1479_s14 = sld [smem:[#allocation18_spill]] }
 0x157   : > { %s1480_s25 = sld [smem:[#allocation17_spill]]  ;;  %s1481_s12 = smov %s1196_s13 }
 0x158   : > { %s1483_s15 = smov %s1208_s16 }
 0x159   :  { %21 = sbr.rel (!%p19_p2) target bundleno = 10 (0xa), region = 109 }
 0x15b   : > { %s1482_s13 = smov %s1478_s20 }
 0x15d   : > { %s1484_s16 = smov %s1480_s25 }
 0x15e   :  { %689 = vsyncpa [#allocation6], 1 }
 0x15f   :  { %691 = vsyncpa [#allocation6 + $0x1], 1 }
 0x160   :  { %692 = vsyncpa [#allocation9], 1 }
 0x161   :  { %694 = vsyncpa [#allocation9 + $0x1], 1 }
 0x162   :  { %695 = vsyncpa [#allocation7], 1 }
 0x163   :  { %697 = vsyncpa [#allocation7 + $0x1], 1 }

</bundles_post_ra>
